<compile_context>
chip_gen: v7x
topology: tpu7x:2x2x1
jax: 0.10.0
libtpu: 0.0.40
codegen_flags: <defaults>
</compile_context>

<pallas_src>
import functools

import numpy as np
import jax
import jax.numpy as jnp
from jax import lax
from jax.experimental import pallas as pl
from jax.experimental.pallas import tpu as pltpu

PAD = 2          # 5x5 "same" pooling radius; 9x9 / 13x13 come from the SPPF cascade
N_BRANCH = 4     # [identity, pool5, pool9, pool13]


def _spp_kernel(x_ref, h_ref, w_ref, o_ref, *, img_w):
    """SPP on one (batch row, channel block).

    x_ref : (1, CB, HW)       input block; spatial flattened onto the lane axis
    h_ref : (1, 1, HW) int32  row index  h = s // W  (host precomputed)
    w_ref : (1, 1, HW) int32  col index  w = s %  W
    o_ref : (1, 4, CB, HW)    [x, pool5, pool9, pool13]
    """
    x = x_ref[...]
    o_ref[:, 0] = x                              # identity branch (lane-dense store)

    h = h_ref[...]
    w = w_ref[...]
    hw = x.shape[-1]

    def near(a, b):                              # |a - b| <= PAD (int32)
        d = a - b
        return jnp.maximum(d, -d) <= PAD

    def window_shifts(flat_offsets, is_member):
        """(roll amount, additive 0/-inf penalty) pairs for one separable pass.

        The row/col index maps are rolled by the same amounts as the data will
        be, so the membership test is exact for every lane regardless of the
        hardware rotate direction and of wrap-around at the array ends.
        """
        shifts, seen = [], set()
        for off in flat_offsets:
            for amt in (off % hw, (-off) % hw):  # both shift directions
                if amt == 0 or amt in seen:
                    continue
                seen.add(amt)
                member = is_member(pltpu.roll(h, amt, 2), pltpu.roll(w, amt, 2))
                penalty = jnp.where(member, 0.0, -jnp.inf).astype(x.dtype)
                shifts.append((amt, penalty))
        return shifts

    # pass 1: 5-wide max along W  (source in same row,    |dw| <= 2)
    w_shifts = window_shifts(range(1, PAD + 1),
                             lambda sh, sw: (sh == h) & near(sw, w))
    # pass 2: 5-tall max along H  (source in same column, |dh| <= 2)
    h_shifts = window_shifts([d * img_w for d in range(1, PAD + 1)],
                             lambda sh, sw: (sw == w) & near(sh, h))

    cur = x
    for branch in range(1, N_BRANCH):            # pool5, pool9=pool5^2, pool13=pool5^3
        acc = cur
        for amt, pen in w_shifts:                # running max held in vregs
            acc = jnp.maximum(acc, pltpu.roll(cur, amt, 2) + pen)
        out = acc
        for amt, pen in h_shifts:
            out = jnp.maximum(out, pltpu.roll(acc, amt, 2) + pen)
        o_ref[:, branch] = out
        cur = out                                # feed the next cascade stage


def _choose_channel_block(N, C, HW, itemsize):
    """Channel-block size (sublane axis).  NB is fixed at 1: more, smaller grid
    steps keep both v7x TensorCores fed and the DMA pipeline overlapped."""
    lanes = -(-HW // 128) * 128                  # lane-padded spatial extent
    if C % 8 != 0:
        return C                                 # full-C block (legal for any C)
    target = 512 * 1024                          # ~padded bytes per input block
    cb = min(C, max(8, (target // (lanes * itemsize)) // 8 * 8))
    while C % cb:                                # largest multiple-of-8 divisor of C
        cb -= 8
    if N == 1 and cb == C and C % 16 == 0:       # guarantee >= 2 grid steps
        cb = C // 2
    return cb


def spp(x):
    """PyTorch-compatible SPP: x (N, C, H, W) -> (N, 4C, H, W)."""
    N, C, H, W = x.shape
    HW = H * W
    dtype = x.dtype
    assert jnp.issubdtype(dtype, jnp.floating), "SPP kernel expects a float input"

    CB = _choose_channel_block(N, C, HW, dtype.itemsize)
    grid = (N, C // CB)

    # Host-side spatial index maps (avoids in-kernel integer div/mod).
    pos = np.arange(HW, dtype=np.int32)
    h_idx = jnp.asarray((pos // W).reshape(1, 1, HW))
    w_idx = jnp.asarray((pos % W).reshape(1, 1, HW))

    # Honest VMEM budget: 2x input (double-buffered) + 2x 4 outputs + ~4 blocks of
    # live compute temporaries, all in lane/sublane-padded bytes.
    blk = (-(-CB // 8) * 8) * (-(-HW // 128) * 128) * dtype.itemsize
    live = (2 * (1 + N_BRANCH) + 4) * blk
    vmem_limit = int(min(48 << 20, max(live + live // 2, 16 << 20)))

    cost = pl.CostEstimate(                      # memory-bound: 5 B/elem moved
        flops=2 * 24 * N * C * HW,               # 24 max + 24 masked-add per element
        transcendentals=0,
        bytes_accessed=(1 + N_BRANCH) * N * C * HW * dtype.itemsize)

    kernel = functools.partial(_spp_kernel, img_w=W)
    y = pl.pallas_call(
        kernel,
        out_shape=jax.ShapeDtypeStruct((N, N_BRANCH, C, HW), dtype),
        grid=grid,
        in_specs=[
            pl.BlockSpec((1, CB, HW), lambda n, c: (n, c, 0)),
            pl.BlockSpec((1, 1, HW), lambda n, c: (0, 0, 0)),
            pl.BlockSpec((1, 1, HW), lambda n, c: (0, 0, 0)),
        ],
        out_specs=pl.BlockSpec((1, N_BRANCH, CB, HW), lambda n, c: (n, 0, c, 0)),
        compiler_params=pltpu.CompilerParams(
            dimension_semantics=("parallel", "parallel"),
            vmem_limit_bytes=vmem_limit),
        cost_estimate=cost,
    )(x.reshape(N, C, HW), h_idx, w_idx)         # NCHW -> (N, C, HW): free reshape

    return y.reshape(N, N_BRANCH * C, H, W)      # (N, 4, C, HW) -> (N, 4C, H, W): free


def spp_reference(x):
    """Pure-JAX reference using lax.reduce_window (mirrors F.max_pool2d + cat)."""
    outs = [x]
    for k in (5, 9, 13):
        p = k // 2
        outs.append(lax.reduce_window(
            x, -jnp.inf, lax.max,
            window_dimensions=(1, 1, k, k), window_strides=(1, 1, 1, 1),
            padding=((0, 0), (0, 0), (p, p), (p, p))))
    return jnp.concatenate(outs, axis=1)


if __name__ == "__main__":
    # SPP has no learnable parameters, so nothing to initialize.
    key = jax.random.PRNGKey(0)
    x = jax.random.normal(key, (2, 4, 16, 16), dtype=jnp.float32)

    out = jax.block_until_ready(jax.jit(spp)(x))
    ref = spp_reference(x)

    assert out.shape == (2, 16, 16, 16), out.shape
    assert jnp.array_equal(out, ref), "mismatch vs reference"
    print("KERNEL_OK")
</pallas_src>

<mosaic_0001>
module attributes {stable_mosaic.version = 11 : i64} {
  func.func @_spp_kernel(%arg0: i32, %arg1: i32, %arg2: memref<1x4x256xf32, #tpu.memory_space<vmem>>, %arg3: memref<1x1x256xi32, #tpu.memory_space<vmem>>, %arg4: memref<1x1x256xi32, #tpu.memory_space<vmem>>, %arg5: memref<1x4x4x256xf32, #tpu.memory_space<vmem>>) attributes {dimension_semantics = [#tpu.dimension_semantics<parallel>, #tpu.dimension_semantics<parallel>], iteration_bounds = array<i64: 2, 1>, scalar_prefetch = 0 : i64, scratch_operands = 0 : i64, tpu.core_type = #tpu.core_type<tc>, window_params = [{transform_indices = @transform_0, window_bounds = array<i64: 1, 4, 256>}, {pipeline_mode = #tpu.pipeline_mode<synchronous>, transform_indices = @transform_1, window_bounds = array<i64: 1, 1, 256>}, {pipeline_mode = #tpu.pipeline_mode<synchronous>, transform_indices = @transform_2, window_bounds = array<i64: 1, 1, 256>}, {transform_indices = @transform_3, window_bounds = array<i64: 1, 4, 4, 256>}]} {
    %c0 = arith.constant 0 : index
    %c0_0 = arith.constant 0 : index
    %c0_1 = arith.constant 0 : index
    %0 = vector.load %arg2[%c0, %c0_0, %c0_1] : memref<1x4x256xf32, #tpu.memory_space<vmem>>, vector<1x4x256xf32>
    %c0_2 = arith.constant 0 : index
    %c0_3 = arith.constant 0 : index
    %c0_4 = arith.constant 0 : index
    %c0_5 = arith.constant 0 : index
    %1 = vector.load %arg5[%c0_2, %c0_3, %c0_4, %c0_5] : memref<1x4x4x256xf32, #tpu.memory_space<vmem>>, vector<1x1x4x256xf32>
    %2 = vector.shape_cast %1 : vector<1x1x4x256xf32> to vector<1x4x256xf32>
    %3 = vector.shape_cast %0 : vector<1x4x256xf32> to vector<1x1x4x256xf32>
    tpu.vector_store %arg5[%c0_2, %c0_3, %c0_4, %c0_5], %3 {strides = array<i32>} : memref<1x4x4x256xf32, #tpu.memory_space<vmem>>, vector<1x1x4x256xf32>,
    %c0_6 = arith.constant 0 : index
    %c0_7 = arith.constant 0 : index
    %c0_8 = arith.constant 0 : index
    %4 = vector.load %arg3[%c0_6, %c0_7, %c0_8] : memref<1x1x256xi32, #tpu.memory_space<vmem>>, vector<1x1x256xi32>
    %c0_9 = arith.constant 0 : index
    %c0_10 = arith.constant 0 : index
    %c0_11 = arith.constant 0 : index
    %5 = vector.load %arg4[%c0_9, %c0_10, %c0_11] : memref<1x1x256xi32, #tpu.memory_space<vmem>>, vector<1x1x256xi32>
    %c1_i32 = arith.constant 1 : i32
    %6 = tpu.dynamic_rotate %4 by %c1_i32 dim 2 : vector<1x1x256xi32>, i32 -> vector<1x1x256xi32>
    %c1_i32_12 = arith.constant 1 : i32
    %7 = tpu.dynamic_rotate %5 by %c1_i32_12 dim 2 : vector<1x1x256xi32>, i32 -> vector<1x1x256xi32>
    %8 = arith.cmpi eq, %6, %4 : vector<1x1x256xi32>
    %9 = arith.subi %7, %5 : vector<1x1x256xi32>
    %c0_i32 = arith.constant 0 : i32
    %10 = vector.broadcast %c0_i32 : i32 to vector<1x1x256xi32>
    %11 = arith.subi %10, %9 : vector<1x1x256xi32>
    %12 = arith.maxsi %9, %11 : vector<1x1x256xi32>
    %c2_i32 = arith.constant 2 : i32
    %13 = vector.broadcast %c2_i32 : i32 to vector<1x1x256xi32>
    %14 = arith.cmpi sle, %12, %13 : vector<1x1x256xi32>
    %15 = arith.andi %8, %14 : vector<1x1x256xi1>
    %cst = arith.constant 0.000000e+00 : f32
    %cst_13 = arith.constant 0xFF800000 : f32
    %16 = vector.broadcast %cst : f32 to vector<1x1x256xf32>
    %17 = vector.broadcast %cst_13 : f32 to vector<1x1x256xf32>
    %18 = arith.select %15, %16, %17 : vector<1x1x256xi1>, vector<1x1x256xf32>
    %c255_i32 = arith.constant 255 : i32
    %19 = tpu.dynamic_rotate %4 by %c255_i32 dim 2 : vector<1x1x256xi32>, i32 -> vector<1x1x256xi32>
    %c255_i32_14 = arith.constant 255 : i32
    %20 = tpu.dynamic_rotate %5 by %c255_i32_14 dim 2 : vector<1x1x256xi32>, i32 -> vector<1x1x256xi32>
    %21 = arith.cmpi eq, %19, %4 : vector<1x1x256xi32>
    %22 = arith.subi %20, %5 : vector<1x1x256xi32>
    %c0_i32_15 = arith.constant 0 : i32
    %23 = vector.broadcast %c0_i32_15 : i32 to vector<1x1x256xi32>
    %24 = arith.subi %23, %22 : vector<1x1x256xi32>
    %25 = arith.maxsi %22, %24 : vector<1x1x256xi32>
    %c2_i32_16 = arith.constant 2 : i32
    %26 = vector.broadcast %c2_i32_16 : i32 to vector<1x1x256xi32>
    %27 = arith.cmpi sle, %25, %26 : vector<1x1x256xi32>
    %28 = arith.andi %21, %27 : vector<1x1x256xi1>
    %cst_17 = arith.constant 0.000000e+00 : f32
    %cst_18 = arith.constant 0xFF800000 : f32
    %29 = vector.broadcast %cst_17 : f32 to vector<1x1x256xf32>
    %30 = vector.broadcast %cst_18 : f32 to vector<1x1x256xf32>
    %31 = arith.select %28, %29, %30 : vector<1x1x256xi1>, vector<1x1x256xf32>
    %c2_i32_19 = arith.constant 2 : i32
    %32 = tpu.dynamic_rotate %4 by %c2_i32_19 dim 2 : vector<1x1x256xi32>, i32 -> vector<1x1x256xi32>
    %c2_i32_20 = arith.constant 2 : i32
    %33 = tpu.dynamic_rotate %5 by %c2_i32_20 dim 2 : vector<1x1x256xi32>, i32 -> vector<1x1x256xi32>
    %34 = arith.cmpi eq, %32, %4 : vector<1x1x256xi32>
    %35 = arith.subi %33, %5 : vector<1x1x256xi32>
    %c0_i32_21 = arith.constant 0 : i32
    %36 = vector.broadcast %c0_i32_21 : i32 to vector<1x1x256xi32>
    %37 = arith.subi %36, %35 : vector<1x1x256xi32>
    %38 = arith.maxsi %35, %37 : vector<1x1x256xi32>
    %c2_i32_22 = arith.constant 2 : i32
    %39 = vector.broadcast %c2_i32_22 : i32 to vector<1x1x256xi32>
    %40 = arith.cmpi sle, %38, %39 : vector<1x1x256xi32>
    %41 = arith.andi %34, %40 : vector<1x1x256xi1>
    %cst_23 = arith.constant 0.000000e+00 : f32
    %cst_24 = arith.constant 0xFF800000 : f32
    %42 = vector.broadcast %cst_23 : f32 to vector<1x1x256xf32>
    %43 = vector.broadcast %cst_24 : f32 to vector<1x1x256xf32>
    %44 = arith.select %41, %42, %43 : vector<1x1x256xi1>, vector<1x1x256xf32>
    %c254_i32 = arith.constant 254 : i32
    %45 = tpu.dynamic_rotate %4 by %c254_i32 dim 2 : vector<1x1x256xi32>, i32 -> vector<1x1x256xi32>
    %c254_i32_25 = arith.constant 254 : i32
    %46 = tpu.dynamic_rotate %5 by %c254_i32_25 dim 2 : vector<1x1x256xi32>, i32 -> vector<1x1x256xi32>
    %47 = arith.cmpi eq, %45, %4 : vector<1x1x256xi32>
    %48 = arith.subi %46, %5 : vector<1x1x256xi32>
    %c0_i32_26 = arith.constant 0 : i32
    %49 = vector.broadcast %c0_i32_26 : i32 to vector<1x1x256xi32>
    %50 = arith.subi %49, %48 : vector<1x1x256xi32>
    %51 = arith.maxsi %48, %50 : vector<1x1x256xi32>
    %c2_i32_27 = arith.constant 2 : i32
    %52 = vector.broadcast %c2_i32_27 : i32 to vector<1x1x256xi32>
    %53 = arith.cmpi sle, %51, %52 : vector<1x1x256xi32>
    %54 = arith.andi %47, %53 : vector<1x1x256xi1>
    %cst_28 = arith.constant 0.000000e+00 : f32
    %cst_29 = arith.constant 0xFF800000 : f32
    %55 = vector.broadcast %cst_28 : f32 to vector<1x1x256xf32>
    %56 = vector.broadcast %cst_29 : f32 to vector<1x1x256xf32>
    %57 = arith.select %54, %55, %56 : vector<1x1x256xi1>, vector<1x1x256xf32>
    %c16_i32 = arith.constant 16 : i32
    %58 = tpu.dynamic_rotate %4 by %c16_i32 dim 2 : vector<1x1x256xi32>, i32 -> vector<1x1x256xi32>
    %c16_i32_30 = arith.constant 16 : i32
    %59 = tpu.dynamic_rotate %5 by %c16_i32_30 dim 2 : vector<1x1x256xi32>, i32 -> vector<1x1x256xi32>
    %60 = arith.cmpi eq, %59, %5 : vector<1x1x256xi32>
    %61 = arith.subi %58, %4 : vector<1x1x256xi32>
    %c0_i32_31 = arith.constant 0 : i32
    %62 = vector.broadcast %c0_i32_31 : i32 to vector<1x1x256xi32>
    %63 = arith.subi %62, %61 : vector<1x1x256xi32>
    %64 = arith.maxsi %61, %63 : vector<1x1x256xi32>
    %c2_i32_32 = arith.constant 2 : i32
    %65 = vector.broadcast %c2_i32_32 : i32 to vector<1x1x256xi32>
    %66 = arith.cmpi sle, %64, %65 : vector<1x1x256xi32>
    %67 = arith.andi %60, %66 : vector<1x1x256xi1>
    %cst_33 = arith.constant 0.000000e+00 : f32
    %cst_34 = arith.constant 0xFF800000 : f32
    %68 = vector.broadcast %cst_33 : f32 to vector<1x1x256xf32>
    %69 = vector.broadcast %cst_34 : f32 to vector<1x1x256xf32>
    %70 = arith.select %67, %68, %69 : vector<1x1x256xi1>, vector<1x1x256xf32>
    %c240_i32 = arith.constant 240 : i32
    %71 = tpu.dynamic_rotate %4 by %c240_i32 dim 2 : vector<1x1x256xi32>, i32 -> vector<1x1x256xi32>
    %c240_i32_35 = arith.constant 240 : i32
    %72 = tpu.dynamic_rotate %5 by %c240_i32_35 dim 2 : vector<1x1x256xi32>, i32 -> vector<1x1x256xi32>
    %73 = arith.cmpi eq, %72, %5 : vector<1x1x256xi32>
    %74 = arith.subi %71, %4 : vector<1x1x256xi32>
    %c0_i32_36 = arith.constant 0 : i32
    %75 = vector.broadcast %c0_i32_36 : i32 to vector<1x1x256xi32>
    %76 = arith.subi %75, %74 : vector<1x1x256xi32>
    %77 = arith.maxsi %74, %76 : vector<1x1x256xi32>
    %c2_i32_37 = arith.constant 2 : i32
    %78 = vector.broadcast %c2_i32_37 : i32 to vector<1x1x256xi32>
    %79 = arith.cmpi sle, %77, %78 : vector<1x1x256xi32>
    %80 = arith.andi %73, %79 : vector<1x1x256xi1>
    %cst_38 = arith.constant 0.000000e+00 : f32
    %cst_39 = arith.constant 0xFF800000 : f32
    %81 = vector.broadcast %cst_38 : f32 to vector<1x1x256xf32>
    %82 = vector.broadcast %cst_39 : f32 to vector<1x1x256xf32>
    %83 = arith.select %80, %81, %82 : vector<1x1x256xi1>, vector<1x1x256xf32>
    %c32_i32 = arith.constant 32 : i32
    %84 = tpu.dynamic_rotate %4 by %c32_i32 dim 2 : vector<1x1x256xi32>, i32 -> vector<1x1x256xi32>
    %c32_i32_40 = arith.constant 32 : i32
    %85 = tpu.dynamic_rotate %5 by %c32_i32_40 dim 2 : vector<1x1x256xi32>, i32 -> vector<1x1x256xi32>
    %86 = arith.cmpi eq, %85, %5 : vector<1x1x256xi32>
    %87 = arith.subi %84, %4 : vector<1x1x256xi32>
    %c0_i32_41 = arith.constant 0 : i32
    %88 = vector.broadcast %c0_i32_41 : i32 to vector<1x1x256xi32>
    %89 = arith.subi %88, %87 : vector<1x1x256xi32>
    %90 = arith.maxsi %87, %89 : vector<1x1x256xi32>
    %c2_i32_42 = arith.constant 2 : i32
    %91 = vector.broadcast %c2_i32_42 : i32 to vector<1x1x256xi32>
    %92 = arith.cmpi sle, %90, %91 : vector<1x1x256xi32>
    %93 = arith.andi %86, %92 : vector<1x1x256xi1>
    %cst_43 = arith.constant 0.000000e+00 : f32
    %cst_44 = arith.constant 0xFF800000 : f32
    %94 = vector.broadcast %cst_43 : f32 to vector<1x1x256xf32>
    %95 = vector.broadcast %cst_44 : f32 to vector<1x1x256xf32>
    %96 = arith.select %93, %94, %95 : vector<1x1x256xi1>, vector<1x1x256xf32>
    %c224_i32 = arith.constant 224 : i32
    %97 = tpu.dynamic_rotate %4 by %c224_i32 dim 2 : vector<1x1x256xi32>, i32 -> vector<1x1x256xi32>
    %c224_i32_45 = arith.constant 224 : i32
    %98 = tpu.dynamic_rotate %5 by %c224_i32_45 dim 2 : vector<1x1x256xi32>, i32 -> vector<1x1x256xi32>
    %99 = arith.cmpi eq, %98, %5 : vector<1x1x256xi32>
    %100 = arith.subi %97, %4 : vector<1x1x256xi32>
    %c0_i32_46 = arith.constant 0 : i32
    %101 = vector.broadcast %c0_i32_46 : i32 to vector<1x1x256xi32>
    %102 = arith.subi %101, %100 : vector<1x1x256xi32>
    %103 = arith.maxsi %100, %102 : vector<1x1x256xi32>
    %c2_i32_47 = arith.constant 2 : i32
    %104 = vector.broadcast %c2_i32_47 : i32 to vector<1x1x256xi32>
    %105 = arith.cmpi sle, %103, %104 : vector<1x1x256xi32>
    %106 = arith.andi %99, %105 : vector<1x1x256xi1>
    %cst_48 = arith.constant 0.000000e+00 : f32
    %cst_49 = arith.constant 0xFF800000 : f32
    %107 = vector.broadcast %cst_48 : f32 to vector<1x1x256xf32>
    %108 = vector.broadcast %cst_49 : f32 to vector<1x1x256xf32>
    %109 = arith.select %106, %107, %108 : vector<1x1x256xi1>, vector<1x1x256xf32>
    %c1_i32_50 = arith.constant 1 : i32
    %110 = tpu.dynamic_rotate %0 by %c1_i32_50 dim 2 : vector<1x4x256xf32>, i32 -> vector<1x4x256xf32>
    %111 = vector.broadcast %18 : vector<1x1x256xf32> to vector<1x4x256xf32>
    %112 = arith.addf %110, %111 : vector<1x4x256xf32>
    %113 = arith.maximumf %0, %112 : vector<1x4x256xf32>
    %c255_i32_51 = arith.constant 255 : i32
    %114 = tpu.dynamic_rotate %0 by %c255_i32_51 dim 2 : vector<1x4x256xf32>, i32 -> vector<1x4x256xf32>
    %115 = vector.broadcast %31 : vector<1x1x256xf32> to vector<1x4x256xf32>
    %116 = arith.addf %114, %115 : vector<1x4x256xf32>
    %117 = arith.maximumf %113, %116 : vector<1x4x256xf32>
    %c2_i32_52 = arith.constant 2 : i32
    %118 = tpu.dynamic_rotate %0 by %c2_i32_52 dim 2 : vector<1x4x256xf32>, i32 -> vector<1x4x256xf32>
    %119 = vector.broadcast %44 : vector<1x1x256xf32> to vector<1x4x256xf32>
    %120 = arith.addf %118, %119 : vector<1x4x256xf32>
    %121 = arith.maximumf %117, %120 : vector<1x4x256xf32>
    %c254_i32_53 = arith.constant 254 : i32
    %122 = tpu.dynamic_rotate %0 by %c254_i32_53 dim 2 : vector<1x4x256xf32>, i32 -> vector<1x4x256xf32>
    %123 = vector.broadcast %57 : vector<1x1x256xf32> to vector<1x4x256xf32>
    %124 = arith.addf %122, %123 : vector<1x4x256xf32>
    %125 = arith.maximumf %121, %124 : vector<1x4x256xf32>
    %c16_i32_54 = arith.constant 16 : i32
    %126 = tpu.dynamic_rotate %125 by %c16_i32_54 dim 2 : vector<1x4x256xf32>, i32 -> vector<1x4x256xf32>
    %127 = vector.broadcast %70 : vector<1x1x256xf32> to vector<1x4x256xf32>
    %128 = arith.addf %126, %127 : vector<1x4x256xf32>
    %129 = arith.maximumf %125, %128 : vector<1x4x256xf32>
    %c240_i32_55 = arith.constant 240 : i32
    %130 = tpu.dynamic_rotate %125 by %c240_i32_55 dim 2 : vector<1x4x256xf32>, i32 -> vector<1x4x256xf32>
    %131 = vector.broadcast %83 : vector<1x1x256xf32> to vector<1x4x256xf32>
    %132 = arith.addf %130, %131 : vector<1x4x256xf32>
    %133 = arith.maximumf %129, %132 : vector<1x4x256xf32>
    %c32_i32_56 = arith.constant 32 : i32
    %134 = tpu.dynamic_rotate %125 by %c32_i32_56 dim 2 : vector<1x4x256xf32>, i32 -> vector<1x4x256xf32>
    %135 = vector.broadcast %96 : vector<1x1x256xf32> to vector<1x4x256xf32>
    %136 = arith.addf %134, %135 : vector<1x4x256xf32>
    %137 = arith.maximumf %133, %136 : vector<1x4x256xf32>
    %c224_i32_57 = arith.constant 224 : i32
    %138 = tpu.dynamic_rotate %125 by %c224_i32_57 dim 2 : vector<1x4x256xf32>, i32 -> vector<1x4x256xf32>
    %139 = vector.broadcast %109 : vector<1x1x256xf32> to vector<1x4x256xf32>
    %140 = arith.addf %138, %139 : vector<1x4x256xf32>
    %141 = arith.maximumf %137, %140 : vector<1x4x256xf32>
    %c0_58 = arith.constant 0 : index
    %c1 = arith.constant 1 : index
    %c0_59 = arith.constant 0 : index
    %c0_60 = arith.constant 0 : index
    %142 = vector.load %arg5[%c0_58, %c1, %c0_59, %c0_60] : memref<1x4x4x256xf32, #tpu.memory_space<vmem>>, vector<1x1x4x256xf32>
    %143 = vector.shape_cast %142 : vector<1x1x4x256xf32> to vector<1x4x256xf32>
    %144 = vector.shape_cast %141 : vector<1x4x256xf32> to vector<1x1x4x256xf32>
    tpu.vector_store %arg5[%c0_58, %c1, %c0_59, %c0_60], %144 {strides = array<i32>} : memref<1x4x4x256xf32, #tpu.memory_space<vmem>>, vector<1x1x4x256xf32>,
    %c1_i32_61 = arith.constant 1 : i32
    %145 = tpu.dynamic_rotate %141 by %c1_i32_61 dim 2 : vector<1x4x256xf32>, i32 -> vector<1x4x256xf32>
    %146 = vector.broadcast %18 : vector<1x1x256xf32> to vector<1x4x256xf32>
    %147 = arith.addf %145, %146 : vector<1x4x256xf32>
    %148 = arith.maximumf %141, %147 : vector<1x4x256xf32>
    %c255_i32_62 = arith.constant 255 : i32
    %149 = tpu.dynamic_rotate %141 by %c255_i32_62 dim 2 : vector<1x4x256xf32>, i32 -> vector<1x4x256xf32>
    %150 = vector.broadcast %31 : vector<1x1x256xf32> to vector<1x4x256xf32>
    %151 = arith.addf %149, %150 : vector<1x4x256xf32>
    %152 = arith.maximumf %148, %151 : vector<1x4x256xf32>
    %c2_i32_63 = arith.constant 2 : i32
    %153 = tpu.dynamic_rotate %141 by %c2_i32_63 dim 2 : vector<1x4x256xf32>, i32 -> vector<1x4x256xf32>
    %154 = vector.broadcast %44 : vector<1x1x256xf32> to vector<1x4x256xf32>
    %155 = arith.addf %153, %154 : vector<1x4x256xf32>
    %156 = arith.maximumf %152, %155 : vector<1x4x256xf32>
    %c254_i32_64 = arith.constant 254 : i32
    %157 = tpu.dynamic_rotate %141 by %c254_i32_64 dim 2 : vector<1x4x256xf32>, i32 -> vector<1x4x256xf32>
    %158 = vector.broadcast %57 : vector<1x1x256xf32> to vector<1x4x256xf32>
    %159 = arith.addf %157, %158 : vector<1x4x256xf32>
    %160 = arith.maximumf %156, %159 : vector<1x4x256xf32>
    %c16_i32_65 = arith.constant 16 : i32
    %161 = tpu.dynamic_rotate %160 by %c16_i32_65 dim 2 : vector<1x4x256xf32>, i32 -> vector<1x4x256xf32>
    %162 = vector.broadcast %70 : vector<1x1x256xf32> to vector<1x4x256xf32>
    %163 = arith.addf %161, %162 : vector<1x4x256xf32>
    %164 = arith.maximumf %160, %163 : vector<1x4x256xf32>
    %c240_i32_66 = arith.constant 240 : i32
    %165 = tpu.dynamic_rotate %160 by %c240_i32_66 dim 2 : vector<1x4x256xf32>, i32 -> vector<1x4x256xf32>
    %166 = vector.broadcast %83 : vector<1x1x256xf32> to vector<1x4x256xf32>
    %167 = arith.addf %165, %166 : vector<1x4x256xf32>
    %168 = arith.maximumf %164, %167 : vector<1x4x256xf32>
    %c32_i32_67 = arith.constant 32 : i32
    %169 = tpu.dynamic_rotate %160 by %c32_i32_67 dim 2 : vector<1x4x256xf32>, i32 -> vector<1x4x256xf32>
    %170 = vector.broadcast %96 : vector<1x1x256xf32> to vector<1x4x256xf32>
    %171 = arith.addf %169, %170 : vector<1x4x256xf32>
    %172 = arith.maximumf %168, %171 : vector<1x4x256xf32>
    %c224_i32_68 = arith.constant 224 : i32
    %173 = tpu.dynamic_rotate %160 by %c224_i32_68 dim 2 : vector<1x4x256xf32>, i32 -> vector<1x4x256xf32>
    %174 = vector.broadcast %109 : vector<1x1x256xf32> to vector<1x4x256xf32>
    %175 = arith.addf %173, %174 : vector<1x4x256xf32>
    %176 = arith.maximumf %172, %175 : vector<1x4x256xf32>
    %c0_69 = arith.constant 0 : index
    %c2 = arith.constant 2 : index
    %c0_70 = arith.constant 0 : index
    %c0_71 = arith.constant 0 : index
    %177 = vector.load %arg5[%c0_69, %c2, %c0_70, %c0_71] : memref<1x4x4x256xf32, #tpu.memory_space<vmem>>, vector<1x1x4x256xf32>
    %178 = vector.shape_cast %177 : vector<1x1x4x256xf32> to vector<1x4x256xf32>
    %179 = vector.shape_cast %176 : vector<1x4x256xf32> to vector<1x1x4x256xf32>
    tpu.vector_store %arg5[%c0_69, %c2, %c0_70, %c0_71], %179 {strides = array<i32>} : memref<1x4x4x256xf32, #tpu.memory_space<vmem>>, vector<1x1x4x256xf32>,
    %c1_i32_72 = arith.constant 1 : i32
    %180 = tpu.dynamic_rotate %176 by %c1_i32_72 dim 2 : vector<1x4x256xf32>, i32 -> vector<1x4x256xf32>
    %181 = vector.broadcast %18 : vector<1x1x256xf32> to vector<1x4x256xf32>
    %182 = arith.addf %180, %181 : vector<1x4x256xf32>
    %183 = arith.maximumf %176, %182 : vector<1x4x256xf32>
    %c255_i32_73 = arith.constant 255 : i32
    %184 = tpu.dynamic_rotate %176 by %c255_i32_73 dim 2 : vector<1x4x256xf32>, i32 -> vector<1x4x256xf32>
    %185 = vector.broadcast %31 : vector<1x1x256xf32> to vector<1x4x256xf32>
    %186 = arith.addf %184, %185 : vector<1x4x256xf32>
    %187 = arith.maximumf %183, %186 : vector<1x4x256xf32>
    %c2_i32_74 = arith.constant 2 : i32
    %188 = tpu.dynamic_rotate %176 by %c2_i32_74 dim 2 : vector<1x4x256xf32>, i32 -> vector<1x4x256xf32>
    %189 = vector.broadcast %44 : vector<1x1x256xf32> to vector<1x4x256xf32>
    %190 = arith.addf %188, %189 : vector<1x4x256xf32>
    %191 = arith.maximumf %187, %190 : vector<1x4x256xf32>
    %c254_i32_75 = arith.constant 254 : i32
    %192 = tpu.dynamic_rotate %176 by %c254_i32_75 dim 2 : vector<1x4x256xf32>, i32 -> vector<1x4x256xf32>
    %193 = vector.broadcast %57 : vector<1x1x256xf32> to vector<1x4x256xf32>
    %194 = arith.addf %192, %193 : vector<1x4x256xf32>
    %195 = arith.maximumf %191, %194 : vector<1x4x256xf32>
    %c16_i32_76 = arith.constant 16 : i32
    %196 = tpu.dynamic_rotate %195 by %c16_i32_76 dim 2 : vector<1x4x256xf32>, i32 -> vector<1x4x256xf32>
    %197 = vector.broadcast %70 : vector<1x1x256xf32> to vector<1x4x256xf32>
    %198 = arith.addf %196, %197 : vector<1x4x256xf32>
    %199 = arith.maximumf %195, %198 : vector<1x4x256xf32>
    %c240_i32_77 = arith.constant 240 : i32
    %200 = tpu.dynamic_rotate %195 by %c240_i32_77 dim 2 : vector<1x4x256xf32>, i32 -> vector<1x4x256xf32>
    %201 = vector.broadcast %83 : vector<1x1x256xf32> to vector<1x4x256xf32>
    %202 = arith.addf %200, %201 : vector<1x4x256xf32>
    %203 = arith.maximumf %199, %202 : vector<1x4x256xf32>
    %c32_i32_78 = arith.constant 32 : i32
    %204 = tpu.dynamic_rotate %195 by %c32_i32_78 dim 2 : vector<1x4x256xf32>, i32 -> vector<1x4x256xf32>
    %205 = vector.broadcast %96 : vector<1x1x256xf32> to vector<1x4x256xf32>
    %206 = arith.addf %204, %205 : vector<1x4x256xf32>
    %207 = arith.maximumf %203, %206 : vector<1x4x256xf32>
    %c224_i32_79 = arith.constant 224 : i32
    %208 = tpu.dynamic_rotate %195 by %c224_i32_79 dim 2 : vector<1x4x256xf32>, i32 -> vector<1x4x256xf32>
    %209 = vector.broadcast %109 : vector<1x1x256xf32> to vector<1x4x256xf32>
    %210 = arith.addf %208, %209 : vector<1x4x256xf32>
    %211 = arith.maximumf %207, %210 : vector<1x4x256xf32>
    %c0_80 = arith.constant 0 : index
    %c3 = arith.constant 3 : index
    %c0_81 = arith.constant 0 : index
    %c0_82 = arith.constant 0 : index
    %212 = vector.load %arg5[%c0_80, %c3, %c0_81, %c0_82] : memref<1x4x4x256xf32, #tpu.memory_space<vmem>>, vector<1x1x4x256xf32>
    %213 = vector.shape_cast %212 : vector<1x1x4x256xf32> to vector<1x4x256xf32>
    %214 = vector.shape_cast %211 : vector<1x4x256xf32> to vector<1x1x4x256xf32>
    tpu.vector_store %arg5[%c0_80, %c3, %c0_81, %c0_82], %214 {strides = array<i32>} : memref<1x4x4x256xf32, #tpu.memory_space<vmem>>, vector<1x1x4x256xf32>,
    return
  }
  func.func @transform_0(%arg0: i32, %arg1: i32) -> (i32, i32, i32) {
    %c0_i32 = arith.constant 0 : i32
    %c0_i32_0 = arith.constant 0 : i32
    return %arg0, %arg1, %c0_i32 : i32, i32, i32
  }
  func.func @transform_1(%arg0: i32, %arg1: i32) -> (i32, i32, i32) {
    %c0_i32 = arith.constant 0 : i32
    %c0_i32_0 = arith.constant 0 : i32
    %c0_i32_1 = arith.constant 0 : i32
    %c0_i32_2 = arith.constant 0 : i32
    return %c0_i32, %c0_i32_0, %c0_i32_1 : i32, i32, i32
  }
  func.func @transform_2(%arg0: i32, %arg1: i32) -> (i32, i32, i32) {
    %c0_i32 = arith.constant 0 : i32
    %c0_i32_0 = arith.constant 0 : i32
    %c0_i32_1 = arith.constant 0 : i32
    %c0_i32_2 = arith.constant 0 : i32
    return %c0_i32, %c0_i32_0, %c0_i32_1 : i32, i32, i32
  }
  func.func @transform_3(%arg0: i32, %arg1: i32) -> (i32, i32, i32, i32) {
    %c0_i32 = arith.constant 0 : i32
    %c0_i32_0 = arith.constant 0 : i32
    %c0_i32_1 = arith.constant 0 : i32
    return %arg0, %c0_i32, %arg1, %c0_i32_0 : i32, i32, i32, i32
  }
}

</mosaic_0001>

<bundles_post_ra>
// kernel: spp.1
= control target key start
LH: loop header
LB: loop body
LE: loop exit
PB: predicated region body
PF: predicated region fallthrough
CT: control target
= control target key end

     0   :  { %s1056_s12 = smov 0   ;;  %s1058_s13 = smov 0   ;;  %s1604_s0 = inlined_call_operand.vmem [shape: f32[2,4,256], index: 0, kind: input, shape index: {}]   ;;  %s1605_s1 = inlined_call_operand.vmem [shape: s32[1,1,256], index: 1, kind: input, shape index: {}]   ;;  %s1606_s2 = inlined_call_operand.vmem [shape: s32[1,1,256], index: 2, kind: input, shape index: {}]   ;;  %s1607_s3 = inlined_call_operand.vmem [shape: f32[2,4,4,256], index: 3, kind: output, shape index: {}]  }
   0x1   :  { %s1060_s14 = smov 0  }
   0x2 LB: > { %s25_s15 = sadd.s32 1, %s1021_s13  ;;  %p957_p0 = scmp.ge.s32.totalorder %s1025_s14, 1  ;;  %s1025_s14 = sphi %s1060_s14, %s13_s14   ;;  %s1021_s13 = sphi %s1058_s13, %s1659_s13   ;;  %s1017_s12 = sphi %s1056_s12, %s1658_s12  }
   0x3   : > { %p27_p1 = scmp.ge.s32.totalorder %s25_s15, 2  ;;  %p157_p2 = scmp.lt.s32.totalorder %s1025_s14, 3 }
   0x5   : > { %s1661_s15 = smov (%p27_p1, %s25_s15), 0  ;;  %p158_p3 = pnand %p957_p0, %p157_p2 }
   0x6   : > { %v211_v0 = vlaneseq (!%p158_p3)  ;;  %v210_v2 = vld [vmem:[%s1606_s2] sm:$0x3] (!%p158_p3)  ;;  %s1027_s18 = smov (!%p158_p3), 127   ;;  %s1028_s19 = smov (!%p158_p3), 1  }
   0x7   : > { %161 = sbr.rel (%p158_p3) target bundleno = 861 (0x35d), region = 32  ;;  %v209_v7 = vld [vmem:[%s1605_s1] sm:$0x3] (!%p158_p3)  ;;  %p189_p4 = scmp.lt.s32.totalorder (!%p158_p3), %s1017_s12, 1 }
   0x8   : > { %v212_v1 = vshrl.u32 (!%p158_p3), %v211_v0, 7  ;;  %s1029_s22 = smov (!%p158_p3), 2   ;;  %s1030_s24 = smov (!%p158_p3), 126   ;;  %v1184_v12 = vand.u32 (!%p158_p3), 127, %v211_v0 }
   0x9   : > { %s1031_s28 = smov (!%p158_p3), 16   ;;  %s1032_s29 = smov (!%p158_p3), 112  }
   0xa   : > { %v1080_v3 = vsub.s32 (!%p158_p3), 0, %v212_v1  ;;  %v217_v4 = vsub.s32 (!%p158_p3), 1, %v212_v1  ;;  %s1033_s30 = smov (!%p158_p3), 32   ;;  %s1034_s4 = smov (!%p158_p3), 96   ;;  %vm1611_vm0 = vcmp.lt.s32.totalorder (!%p158_p3), %v1184_v12, 1  ;;  %vm1608_vm1 = vcmp.lt.s32.totalorder (!%p158_p3), %v1184_v12, 127 }
   0xb   : > { %vm1610_vm2 = vcmp.lt.s32.totalorder (!%p158_p3), %v1184_v12, 2  ;;  %vm1609_vm3 = vcmp.lt.s32.totalorder (!%p158_p3), %v1184_v12, 126 }
   0xc   : > { %v1083_v5 = vrot.slane (!%p158_p3), %v210_v2, %v1080_v3  ;;  %v1089_v6 = vrot.slane (!%p158_p3), %v210_v2, %v217_v4  ;;  %v1103_v8 = vrot.slane (!%p158_p3), %v209_v7, %v217_v4  ;;  %v1106_v9 = vrot.slane (!%p158_p3), %v209_v7, %v1080_v3 }
   0xd   : > { %v1035_v7 = vmov (!%p158_p3), -inf  }
   0xe   : > { %265 = vrot.lane.b32.xlu1 %v1083_v5, %s1027_s18  ;;  %236 = vrot.lane.b32.xlu0 %v1083_v5, %s1028_s19  ;;  %s1663_s12 = smov (!%p189_p4, %s1017_s12), 1 }
   0xf   : > { %s967_s23 = sshll.u32 %s1663_s12, 3  ;;  %s968_s5 = sshll.u32 %s1663_s12, 5 }
  0x10   : > { %s197_s27 = scalar_lea.vmem %s1604_s0, %s967_s23  ;;  %s1337_s8 = scalar_lea.vmem %s1607_s3, %s968_s5 }
  0x11   : > { %v1127_v10 = vld [vmem:[%s197_s27] sm:$0xff] }
  0x12   : > { %267 = vrot.lane.b32.xlu1 %v1089_v6, %s1027_s18  ;;  %238 = vrot.lane.b32.xlu0 %v1089_v6, %s1028_s19  ;;  %v462_v11 = vcombine.high %v1127_v10, %v1127_v10  ;;  %208 = vst [vmem:[%s1337_s8] sm:$0xff] %v1127_v10 }
  0x16   : > { %296 = vrot.lane.b32.xlu1 %v1089_v6, %s1029_s22  ;;  %294 = vrot.lane.b32.xlu0 %v1083_v5, %s1029_s22 }
  0x1a   : > { %221 = vrot.lane.b32.xlu1 %v1103_v8, %s1028_s19  ;;  %219 = vrot.lane.b32.xlu0 %v1106_v9, %s1028_s19 }
  0x1e   : > { %325 = vrot.lane.b32.xlu1 %v1089_v6, %s1030_s24  ;;  %323 = vrot.lane.b32.xlu0 %v1083_v5, %s1030_s24 }
  0x22   : > { %260 = vrot.lane.b32.xlu1 %v1103_v8, %s1027_s18  ;;  %258 = vrot.lane.b32.xlu0 %v1106_v9, %s1027_s18 }
  0x26   : > { %289 = vrot.lane.b32.xlu1 %v1103_v8, %s1029_s22  ;;  %287 = vrot.lane.b32.xlu0 %v1106_v9, %s1029_s22 }
  0x2a   : > { %464 = vrot.lane.b32.xlu0 %v1127_v10, %s1028_s19  ;;  %466 = vrot.lane.b32.xlu1 %v462_v11, %s1028_s19 }
  0x2e   : > { %316 = vrot.lane.b32.xlu0 %v1106_v9, %s1030_s24  ;;  %318 = vrot.lane.b32.xlu1 %v1103_v8, %s1030_s24 }
  0x32   : > { %485 = vrot.lane.b32.xlu0 %v1127_v10, %s1027_s18  ;;  %487 = vrot.lane.b32.xlu1 %v462_v11, %s1027_s18 }
  0x36   : > { %506 = vrot.lane.b32.xlu0 %v1127_v10, %s1029_s22  ;;  %508 = vrot.lane.b32.xlu1 %v462_v11, %s1029_s22 }
  0x3a   : > { %527 = vrot.lane.b32.xlu0 %v1127_v10, %s1030_s24  ;;  %529 = vrot.lane.b32.xlu1 %v462_v11, %s1030_s24 }
  0x3e   : > { %345 = vrot.lane.b32.xlu0 %v1106_v9, %s1031_s28  ;;  %347 = vrot.lane.b32.xlu1 %v1103_v8, %s1031_s28 }
  0x42   : > { %374 = vrot.lane.b32.xlu0 %v1106_v9, %s1032_s29  ;;  %376 = vrot.lane.b32.xlu1 %v1103_v8, %s1032_s29 }
  0x46   : > { %403 = vrot.lane.b32.xlu0 %v1106_v9, %s1033_s30  ;;  %405 = vrot.lane.b32.xlu1 %v1103_v8, %s1033_s30 }
  0x4a   : > { %352 = vrot.lane.b32.xlu0 %v1083_v5, %s1031_s28  ;;  %354 = vrot.lane.b32.xlu1 %v1089_v6, %s1031_s28 }
  0x4e   : > { %432 = vrot.lane.b32.xlu0 %v1106_v9, %s1034_s4  ;;  %434 = vrot.lane.b32.xlu1 %v1103_v8, %s1034_s4 }
  0x52   : > { %381 = vrot.lane.b32.xlu0 %v1083_v5, %s1032_s29  ;;  %383 = vrot.lane.b32.xlu1 %v1089_v6, %s1032_s29 }
  0x56   : > { %410 = vrot.lane.b32.xlu0 %v1083_v5, %s1033_s30  ;;  %412 = vrot.lane.b32.xlu1 %v1089_v6, %s1033_s30 }
  0x5a   : > { %439 = vrot.lane.b32.xlu0 %v1083_v5, %s1034_s4  ;;  %441 = vrot.lane.b32.xlu1 %v1089_v6, %s1034_s4 }
  0x80   : > { %v266_v13 = vpop.permute.xlu1 %265  ;;  %v237_v14 = vpop.permute.xlu0 %236 }
  0x84   : > { %v268_v15 = vpop.permute.xlu1 %267  ;;  %v239_v16 = vpop.permute.xlu0 %238 }
  0x85   : > { %v241_v17 = vsel %vm1611_vm0, %v239_v16, %v237_v14  ;;  %v240_v18 = vsel %vm1611_vm0, %v237_v14, %v239_v16  ;;  %v269_v22 = vsel %vm1608_vm1, %v266_v13, %v268_v15  ;;  %v270_v23 = vsel %vm1608_vm1, %v268_v15, %v266_v13 }
  0x86   : > { %v244_v19 = vsub.s32 %v241_v17, %v1083_v5  ;;  %v245_v24 = vsub.s32 %v240_v18, %v1089_v6  ;;  %v273_v25 = vsub.s32 %v269_v22, %v1083_v5  ;;  %v274_v26 = vsub.s32 %v270_v23, %v1089_v6 }
  0x88   : > { %v297_v20 = vpop.permute.xlu1 %296  ;;  %v295_v21 = vpop.permute.xlu0 %294  ;;  %v246_v27 = vsub.s32 0, %v244_v19  ;;  %v247_v32 = vsub.s32 0, %v245_v24  ;;  %v275_v33 = vsub.s32 0, %v273_v25  ;;  %v276_v34 = vsub.s32 0, %v274_v26 }
  0x89   : > { %v299_v30 = vsel %vm1610_vm2, %v297_v20, %v295_v21  ;;  %v298_v31 = vsel %vm1610_vm2, %v295_v21, %v297_v20 }
  0x8a   : > { %v302_v35 = vsub.s32 %v299_v30, %v1083_v5  ;;  %vm248_vm4 = vcmp.gt.s32.totalorder %v244_v19, %v246_v27  ;;  %v303_v38 = vsub.s32 %v298_v31, %v1089_v6  ;;  %vm250_vm5 = vcmp.gt.s32.totalorder %v245_v24, %v247_v32 }
  0x8b   : > { %v249_v41 = vsel %vm248_vm4, %v244_v19, %v246_v27  ;;  %vm277_vm6 = vcmp.gt.s32.totalorder %v273_v25, %v275_v33  ;;  %vm279_vm7 = vcmp.gt.s32.totalorder %v274_v26, %v276_v34  ;;  %v251_v51 = vsel %vm250_vm5, %v245_v24, %v247_v32 }
  0x8c   : > { %v222_v28 = vpop.permute.xlu1 %221  ;;  %v220_v29 = vpop.permute.xlu0 %219  ;;  %v304_v42 = vsub.s32 0, %v302_v35  ;;  %v305_v46 = vsub.s32 0, %v303_v38  ;;  %vm252_vm8 = vcmp.le.s32.totalorder %v249_v41, 2  ;;  %v278_v53 = vsel %vm277_vm6, %v273_v25, %v275_v33 }
  0x8d   : > { %v227_v43 = vsel %vm1611_vm0, %v222_v28, %v220_v29  ;;  %v226_v47 = vsel %vm1611_vm0, %v220_v29, %v222_v28  ;;  %v280_v54 = vsel %vm279_vm7, %v274_v26, %v276_v34  ;;  %vm253_vm14 = vcmp.le.s32.totalorder %v251_v51, 2 }
  0x8e   : > { %vm242_vm9 = vcmp.eq.s32.totalorder %v227_v43, %v1106_v9  ;;  %vm243_vm10 = vcmp.eq.s32.totalorder %v226_v47, %v1103_v8  ;;  %vm306_vm11 = vcmp.gt.s32.totalorder %v302_v35, %v304_v42  ;;  %vm308_vm13 = vcmp.gt.s32.totalorder %v303_v38, %v305_v46 }
  0x8f   : > { %vm1225_vm15 = vmand %vm242_vm9, %vm252_vm8  ;;  %vm281_vm6 = vcmp.le.s32.totalorder %v278_v53, 2  ;;  %vm282_vm7 = vcmp.le.s32.totalorder %v280_v54, 2  ;;  %v307_v63 = vsel %vm306_vm11, %v302_v35, %v304_v42  ;;  %v309_v0 = vsel %vm308_vm13, %v303_v38, %v305_v46 }
  0x90   : > { %v326_v36 = vpop.permute.xlu1 %325  ;;  %v324_v37 = vpop.permute.xlu0 %323  ;;  %vm1230_vm5 = vmand %vm243_vm10, %vm253_vm14  ;;  %v256_v11 = vsel %vm1225_vm15, 0.0, %v1035_v7  ;;  %vm310_vm11 = vcmp.le.s32.totalorder %v307_v63, 2  ;;  %vm311_vm13 = vcmp.le.s32.totalorder %v309_v0, 2 }
  0x91   : > { %v327_v39 = vsel %vm1609_vm3, %v324_v37, %v326_v36  ;;  %v328_v40 = vsel %vm1609_vm3, %v326_v36, %v324_v37  ;;  %v257_v13 = vsel %vm1230_vm5, 0.0, %v1035_v7  ;;  %v1267_v25 = vrot.slane %v256_v11, %v1080_v3 }
  0x92   : > { %v331_v48 = vsub.s32 %v327_v39, %v1083_v5  ;;  %v332_v49 = vsub.s32 %v328_v40, %v1089_v6  ;;  %v1270_v26 = vrot.slane %v257_v13, %v1080_v3 }
  0x94   : > { %v261_v44 = vpop.permute.xlu1 %260  ;;  %v259_v45 = vpop.permute.xlu0 %258  ;;  %v333_v57 = vsub.s32 0, %v331_v48  ;;  %v334_v58 = vsub.s32 0, %v332_v49 }
  0x95   : > { %v263_v50 = vsel %vm1608_vm1, %v259_v45, %v261_v44  ;;  %v264_v52 = vsel %vm1608_vm1, %v261_v44, %v259_v45 }
  0x96   : > { %vm271_vm12 = vcmp.eq.s32.totalorder %v263_v50, %v1106_v9  ;;  %vm272_vm4 = vcmp.eq.s32.totalorder %v264_v52, %v1103_v8  ;;  %vm335_vm9 = vcmp.gt.s32.totalorder %v331_v48, %v333_v57  ;;  %vm337_vm10 = vcmp.gt.s32.totalorder %v332_v49, %v334_v58 }
  0x97   : > { %vm1236_vm1 = vmand %vm271_vm12, %vm281_vm6  ;;  %v336_v17 = vsel %vm335_vm9, %v331_v48, %v333_v57  ;;  %v338_v18 = vsel %vm337_vm10, %v332_v49, %v334_v58  ;;  %vm1623_vm9 = vcmp.lt.s32.totalorder %v1184_v12, 127 }
  0x98   : > { %v290_v55 = vpop.permute.xlu1 %289  ;;  %v288_v56 = vpop.permute.xlu0 %287  ;;  %vm284_vm8 = vmand %vm272_vm4, %vm282_vm7  ;;  %v285_v14 = vsel %vm1236_vm1, 0.0, %v1035_v7  ;;  %vm339_vm5 = vcmp.le.s32.totalorder %v336_v17, 2  ;;  %vm340_vm6 = vcmp.le.s32.totalorder %v338_v18, 2 }
  0x99   : > { %v293_v61 = vsel %vm1610_vm2, %v290_v55, %v288_v56  ;;  %v292_v1 = vsel %vm1610_vm2, %v288_v56, %v290_v55  ;;  %v286_v15 = vsel %vm284_vm8, 0.0, %v1035_v7  ;;  %v1276_v27 = vrot.slane %v285_v14, %v1080_v3  ;;  %vm1624_vm10 = vmmov %vm1623_vm9 }
  0x9a   : > { %vm300_vm12 = vcmp.eq.s32.totalorder %v293_v61, %v1106_v9  ;;  %vm301_vm14 = vcmp.eq.s32.totalorder %v292_v1, %v1103_v8  ;;  %v1279_v28 = vrot.slane %v286_v15, %v1080_v3 }
  0x9b   : > { %vm1254_vm15 = vmand %vm300_vm12, %vm310_vm11  ;;  %vm1613_vm11 = vcmp.lt.s32.totalorder %v1184_v12, 16 }
  0x9c   : > { %v465_v2 = vpop.permute.xlu0 %464  ;;  %v467_v4 = vpop.permute.xlu1 %466  ;;  %vm313_vm1 = vmand %vm301_vm14, %vm311_vm13  ;;  %v314_v33 = vsel %vm1254_vm15, 0.0, %v1035_v7  ;;  %vm1612_vm13 = vcmp.lt.s32.totalorder %v1184_v12, 112  ;;  %vm407_vm14 = vcmp.lt.s32.totalorder %v1184_v12, 32  ;;  %vm1614_vm15 = vcmp.lt.s32.totalorder %v1184_v12, 96 }
  0x9d   : > { %v468_v21 = vsel %vm1611_vm0, %v465_v2, %v467_v4  ;;  %v469_v22 = vsel %vm1611_vm0, %v467_v4, %v465_v2  ;;  %v315_v34 = vsel %vm313_vm1, 0.0, %v1035_v7  ;;  %v1294_v39 = vrot.slane %v314_v33, %v1080_v3 }
  0x9e   : > { %v478_v29 = vadd.f32 %v1267_v25, %v469_v22  ;;  %v479_v30 = vadd.f32 %v1270_v26, %v468_v21  ;;  %v1297_v40 = vrot.slane %v315_v34, %v1080_v3 }
  0xa0   : > { %v317_v16 = vpop.permute.xlu0 %316  ;;  %v319_v19 = vpop.permute.xlu1 %318  ;;  %v482_v41 = vcombine.low %v478_v29, %v479_v30 }
  0xa1   : > { %v321_v23 = vsel %vm1609_vm3, %v317_v16, %v319_v19  ;;  %v322_v24 = vsel %vm1609_vm3, %v319_v19, %v317_v16 }
  0xa2   : > { %vm329_vm4 = vcmp.eq.s32.totalorder %v321_v23, %v1106_v9  ;;  %vm330_vm7 = vcmp.eq.s32.totalorder %v322_v24, %v1103_v8  ;;  %v484_v51 = vmax.f32 %v1127_v10, %v482_v41 }
  0xa3   : > { %vm341_vm8 = vmand %vm329_vm4, %vm339_vm5 }
  0xa4   : > { %v486_v31 = vpop.permute.xlu0 %485  ;;  %v488_v32 = vpop.permute.xlu1 %487  ;;  %vm342_vm12 = vmand %vm330_vm7, %vm340_vm6  ;;  %v343_v44 = vsel %vm341_vm8, 0.0, %v1035_v7 }
  0xa5   : > { %v489_v35 = vsel %vm1623_vm9, %v486_v31, %v488_v32  ;;  %v490_v36 = vsel %vm1624_vm10, %v488_v32, %v486_v31  ;;  %v344_v45 = vsel %vm342_vm12, 0.0, %v1035_v7  ;;  %v1309_v52 = vrot.slane %v343_v44, %v1080_v3 }
  0xa6   : > { %v499_v37 = vadd.f32 %v1276_v27, %v489_v35  ;;  %v500_v38 = vadd.f32 %v1279_v28, %v490_v36  ;;  %v1312_v53 = vrot.slane %v344_v45, %v1080_v3 }
  0xa8   : > { %v507_v42 = vpop.permute.xlu0 %506  ;;  %v509_v43 = vpop.permute.xlu1 %508  ;;  %v503_v48 = vcombine.low %v499_v37, %v500_v38 }
  0xa9   : > { %v510_v46 = vsel %vm1610_vm2, %v507_v42, %v509_v43  ;;  %v511_v47 = vsel %vm1610_vm2, %v509_v43, %v507_v42 }
  0xaa   : > { %v520_v49 = vadd.f32 %v1294_v39, %v511_v47  ;;  %v521_v50 = vadd.f32 %v1297_v40, %v510_v46  ;;  %v505_v59 = vmax.f32 %v484_v51, %v503_v48 }
  0xac   : > { %v524_v54 = vcombine.low %v520_v49, %v521_v50  ;;  %v528_v55 = vpop.permute.xlu0 %527  ;;  %v530_v56 = vpop.permute.xlu1 %529 }
  0xad   : > { %v531_v57 = vsel %vm1609_vm3, %v528_v55, %v530_v56  ;;  %v532_v58 = vsel %vm1609_vm3, %v530_v56, %v528_v55 }
  0xae   : > { %v541_v60 = vadd.f32 %v1309_v52, %v531_v57  ;;  %v542_v61 = vadd.f32 %v1312_v53, %v532_v58  ;;  %v526_v62 = vmax.f32 %v505_v59, %v524_v54 }
  0xb0   : > { %v545_v63 = vcombine.low %v541_v60, %v542_v61  ;;  %v346_v2 = vpop.permute.xlu0 %345  ;;  %v348_v4 = vpop.permute.xlu1 %347 }
  0xb1   : > { %v351_v17 = vsel %vm1613_vm11, %v348_v4, %v346_v2  ;;  %v350_v18 = vsel %vm1613_vm11, %v346_v2, %v348_v4 }
  0xb2   : > { %v1320_v0 = vmax.f32 %v526_v62, %v545_v63  ;;  %v360_v19 = vsub.s32 %v351_v17, %v1106_v9  ;;  %v361_v23 = vsub.s32 %v350_v18, %v1103_v8 }
  0xb4   : > { %551 = vrot.lane.b32.xlu0 %v1320_v0, %s1031_s28  ;;  %v549_v1 = vcombine.high %v1320_v0, %v1320_v0  ;;  %v375_v11 = vpop.permute.xlu0 %374  ;;  %v377_v13 = vpop.permute.xlu1 %376  ;;  %v362_v30 = vsub.s32 0, %v360_v19  ;;  %v363_v34 = vsub.s32 0, %v361_v23 }
  0xb5   : > { %v379_v20 = vsel %vm1612_vm13, %v375_v11, %v377_v13  ;;  %v380_v21 = vsel %vm1612_vm13, %v377_v13, %v375_v11 }
  0xb6   : > { %553 = vrot.lane.b32.xlu1 %v549_v1, %s1031_s28  ;;  %v389_v24 = vsub.s32 %v379_v20, %v1106_v9  ;;  %v390_v29 = vsub.s32 %v380_v21, %v1103_v8  ;;  %vm364_vm1 = vcmp.gt.s32.totalorder %v360_v19, %v362_v30  ;;  %vm366_vm4 = vcmp.gt.s32.totalorder %v361_v23, %v363_v34 }
  0xb7   : > { %v365_v45 = vsel %vm364_vm1, %v360_v19, %v362_v30  ;;  %v367_v51 = vsel %vm366_vm4, %v361_v23, %v363_v34 }
  0xb8   : > { %572 = vrot.lane.b32.xlu0 %v1320_v0, %s1032_s29  ;;  %v404_v14 = vpop.permute.xlu0 %403  ;;  %v406_v15 = vpop.permute.xlu1 %405  ;;  %v391_v35 = vsub.s32 0, %v389_v24  ;;  %v392_v36 = vsub.s32 0, %v390_v29  ;;  %vm368_vm7 = vcmp.le.s32.totalorder %v365_v45, 2  ;;  %vm369_vm12 = vcmp.le.s32.totalorder %v367_v51, 2 }
  0xb9   : > { %v408_v32 = vsel %vm407_vm14, %v404_v14, %v406_v15  ;;  %v409_v33 = vsel %vm407_vm14, %v406_v15, %v404_v14 }
  0xba   : > { %574 = vrot.lane.b32.xlu1 %v549_v1, %s1032_s29  ;;  %v418_v37 = vsub.s32 %v409_v33, %v1106_v9  ;;  %v419_v38 = vsub.s32 %v408_v32, %v1103_v8  ;;  %vm393_vm5 = vcmp.gt.s32.totalorder %v389_v24, %v391_v35  ;;  %vm395_vm6 = vcmp.gt.s32.totalorder %v390_v29, %v392_v36 }
  0xbb   : > { %v394_v56 = vsel %vm393_vm5, %v389_v24, %v391_v35  ;;  %v396_v57 = vsel %vm395_vm6, %v390_v29, %v392_v36 }
  0xbc   : > { %593 = vrot.lane.b32.xlu0 %v1320_v0, %s1033_s30  ;;  %v353_v16 = vpop.permute.xlu0 %352  ;;  %v355_v10 = vpop.permute.xlu1 %354  ;;  %v420_v46 = vsub.s32 0, %v418_v37  ;;  %v421_v47 = vsub.s32 0, %v419_v38  ;;  %vm397_vm4 = vcmp.le.s32.totalorder %v394_v56, 2  ;;  %vm398_vm3 = vcmp.le.s32.totalorder %v396_v57, 2 }
  0xbd   : > { %v357_v48 = vsel %vm1613_vm11, %v355_v10, %v353_v16  ;;  %v356_v54 = vsel %vm1613_vm11, %v353_v16, %v355_v10 }
  0xbe   : > { %595 = vrot.lane.b32.xlu1 %v549_v1, %s1033_s30  ;;  %vm358_vm8 = vcmp.eq.s32.totalorder %v357_v48, %v1083_v5  ;;  %vm422_vm9 = vcmp.gt.s32.totalorder %v418_v37, %v420_v46  ;;  %vm424_vm10 = vcmp.gt.s32.totalorder %v419_v38, %v421_v47  ;;  %vm359_vm1 = vcmp.eq.s32.totalorder %v356_v54, %v1089_v6 }
  0xbf   : > { %vm370_vm5 = vmand %vm358_vm8, %vm368_vm7  ;;  %v423_v62 = vsel %vm422_vm9, %v418_v37, %v420_v46  ;;  %v425_v63 = vsel %vm424_vm10, %v419_v38, %v421_v47 }
  0xc0   : > { %614 = vrot.lane.b32.xlu0 %v1320_v0, %s1034_s4  ;;  %v433_v22 = vpop.permute.xlu0 %432  ;;  %v435_v31 = vpop.permute.xlu1 %434  ;;  %vm371_vm0 = vmand %vm359_vm1, %vm369_vm12  ;;  %v372_v11 = vsel %vm370_vm5, 0.0, %v1035_v7  ;;  %vm426_vm8 = vcmp.le.s32.totalorder %v423_v62, 2  ;;  %vm427_vm9 = vcmp.le.s32.totalorder %v425_v63, 2  ;;  %vm1625_vm1 = vcmp.lt.s32.totalorder %v1184_v12, 96 }
  0xc1   : > { %v437_v42 = vsel %vm1614_vm15, %v433_v22, %v435_v31  ;;  %v438_v43 = vsel %vm1614_vm15, %v435_v31, %v433_v22  ;;  %v373_v14 = vsel %vm371_vm0, 0.0, %v1035_v7  ;;  %vm1629_vm0 = vcmp.lt.s32.totalorder %v1184_v12, 16 }
  0xc2   : > { %616 = vrot.lane.b32.xlu1 %v549_v1, %s1034_s4  ;;  %v447_v49 = vsub.s32 %v437_v42, %v1106_v9  ;;  %v448_v50 = vsub.s32 %v438_v43, %v1103_v8  ;;  %v1411_v24 = vrot.slane %v372_v11, %v1080_v3  ;;  %v1414_v29 = vrot.slane %v373_v14, %v1080_v3 }
  0xc4   : > { %v382_v41 = vpop.permute.xlu0 %381  ;;  %v384_v44 = vpop.permute.xlu1 %383  ;;  %v449_v59 = vsub.s32 0, %v447_v49  ;;  %v450_v9 = vsub.s32 0, %v448_v50 }
  0xc5   : > { %v385_v58 = vsel %vm1612_vm13, %v382_v41, %v384_v44  ;;  %v386_v60 = vsel %vm1612_vm13, %v384_v44, %v382_v41 }
  0xc6   : > { %vm387_vm2 = vcmp.eq.s32.totalorder %v385_v58, %v1083_v5  ;;  %vm388_vm6 = vcmp.eq.s32.totalorder %v386_v60, %v1089_v6  ;;  %vm451_vm13 = vcmp.gt.s32.totalorder %v447_v49, %v449_v59  ;;  %vm453_vm15 = vcmp.gt.s32.totalorder %v448_v50, %v450_v9 }
  0xc7   : > { %vm399_vm11 = vmand %vm387_vm2, %vm397_vm4  ;;  %v452_v15 = vsel %vm451_vm13, %v447_v49, %v449_v59  ;;  %v454_v17 = vsel %vm453_vm15, %v448_v50, %v450_v9 }
  0xc8   : > { %v411_v55 = vpop.permute.xlu0 %410  ;;  %v413_v8 = vpop.permute.xlu1 %412  ;;  %vm400_vm7 = vmand %vm388_vm6, %vm398_vm3  ;;  %v401_v19 = vsel %vm399_vm11, 0.0, %v1035_v7  ;;  %vm455_vm15 = vcmp.le.s32.totalorder %v452_v15, 2  ;;  %vm456_vm5 = vcmp.le.s32.totalorder %v454_v17, 2 }
  0xc9   : > { %v415_v1 = vsel %vm407_vm14, %v413_v8, %v411_v55  ;;  %v414_v2 = vsel %vm407_vm14, %v411_v55, %v413_v8  ;;  %vm1626_vm2 = vmmov %vm1625_vm1  ;;  %v402_v20 = vsel %vm400_vm7, 0.0, %v1035_v7  ;;  %v1420_v31 = vrot.slane %v401_v19, %v1080_v3 }
  0xca   : > { %vm416_vm10 = vcmp.eq.s32.totalorder %v415_v1, %v1083_v5  ;;  %vm417_vm12 = vcmp.eq.s32.totalorder %v414_v2, %v1089_v6  ;;  %vm1630_vm13 = vmmov %vm1629_vm0  ;;  %v1423_v32 = vrot.slane %v402_v20, %v1080_v3 }
  0xcb   : > { %vm1402_vm3 = vmand %vm416_vm10, %vm426_vm8  ;;  %vm1631_vm8 = vcmp.lt.s32.totalorder %v1184_v12, 112 }
  0xcc   : > { %v440_v61 = vpop.permute.xlu0 %439  ;;  %v442_v4 = vpop.permute.xlu1 %441  ;;  %vm429_vm11 = vmand %vm417_vm12, %vm427_vm9  ;;  %v430_v36 = vsel %vm1402_vm3, 0.0, %v1035_v7 }
  0xcd   : > { %v443_v16 = vsel %vm1625_vm1, %v440_v61, %v442_v4  ;;  %v444_v10 = vsel %vm1626_vm2, %v442_v4, %v440_v61  ;;  %vm1632_vm9 = vmmov %vm1631_vm8  ;;  %v1438_v43 = vrot.slane %v430_v36, %v1080_v3  ;;  %vm1634_vm2 = vcmp.lt.s32.totalorder %v1184_v12, 1 }
  0xce   : > { %vm445_vm4 = vcmp.eq.s32.totalorder %v443_v16, %v1083_v5  ;;  %vm446_vm6 = vcmp.eq.s32.totalorder %v444_v10, %v1089_v6  ;;  %v431_v5 = vsel %vm429_vm11, 0.0, %v1035_v7  ;;  %vm1633_vm12 = vmmov %vm1625_vm1  ;;  %vm1638_vm11 = vcmp.lt.s32.totalorder %v1184_v12, 2 }
  0xcf   : > { %vm457_vm7 = vmand %vm445_vm4, %vm455_vm15  ;;  %v1441_v44 = vrot.slane %v431_v5, %v1080_v3  ;;  %vm1640_vm4 = vcmp.lt.s32.totalorder %v1184_v12, 126 }
  0xd0   : > { %vm458_vm10 = vmand %vm446_vm6, %vm456_vm5  ;;  %v459_v47 = vsel %vm457_vm7, 0.0, %v1035_v7  ;;  %vm1642_vm6 = vcmp.lt.s32.totalorder %v1184_v12, 16 }
  0xd1   : > { %v460_v48 = vsel %vm458_vm10, 0.0, %v1035_v7  ;;  %v1452_v56 = vrot.slane %v459_v47, %v1080_v3  ;;  %vm1635_vm3 = vmmov %vm1634_vm2 }
  0xd2   : > { %v1455_v57 = vrot.slane %v460_v48, %v1080_v3  ;;  %vm1639_vm15 = vmmov %vm1638_vm11 }
  0xd3   : > { %vm1641_vm5 = vmmov %vm1640_vm4 }
  0xd4   : > { %vm1643_vm7 = vmmov %vm1642_vm6 }
  0xd5   : > { %vm1645_vm10 = vmmov %vm1625_vm1 }
 0x126   : > { %v552_v13 = vpop.permute.xlu0 %551 }
 0x128   : > { %v554_v18 = vpop.permute.xlu1 %553 }
 0x129   : > { %v555_v22 = vsel %vm1629_vm0, %v552_v13, %v554_v18  ;;  %v556_v23 = vsel %vm1630_vm13, %v554_v18, %v552_v13  ;;  %vm1636_vm0 = vcmp.lt.s32.totalorder %v1184_v12, 127 }
 0x12a   : > { %v573_v30 = vpop.permute.xlu0 %572  ;;  %v565_v33 = vadd.f32 %v1411_v24, %v556_v23  ;;  %v566_v34 = vadd.f32 %v1414_v29, %v555_v22  ;;  %vm1637_vm13 = vmmov %vm1636_vm0 }
 0x12c   : > { %v575_v35 = vpop.permute.xlu1 %574  ;;  %v569_v45 = vcombine.low %v565_v33, %v566_v34 }
 0x12d   : > { %v576_v6 = vsel %vm1631_vm8, %v573_v30, %v575_v35  ;;  %v577_v37 = vsel %vm1632_vm9, %v575_v35, %v573_v30  ;;  %vm1644_vm9 = vmmov %vm1631_vm8 }
 0x12e   : > { %v586_v38 = vadd.f32 %v1420_v31, %v576_v6  ;;  %v587_v41 = vadd.f32 %v1423_v32, %v577_v37  ;;  %v594_v42 = vpop.permute.xlu0 %593  ;;  %v571_v7 = vmax.f32 %v1320_v0, %v569_v45 }
 0x130   : > { %v596_v46 = vpop.permute.xlu1 %595  ;;  %v590_v51 = vcombine.low %v586_v38, %v587_v41 }
 0x131   : > { %v597_v49 = vsel %vm407_vm14, %v594_v42, %v596_v46  ;;  %v598_v50 = vsel %vm407_vm14, %v596_v46, %v594_v42 }
 0x132   : > { %v607_v54 = vadd.f32 %v1438_v43, %v598_v50  ;;  %v608_v55 = vadd.f32 %v1441_v44, %v597_v49  ;;  %v615_v59 = vpop.permute.xlu0 %614  ;;  %v592_v61 = vmax.f32 %v571_v7, %v590_v51 }
 0x134   : > { %v611_v58 = vcombine.low %v607_v54, %v608_v55  ;;  %v617_v60 = vpop.permute.xlu1 %616 }
 0x135   : > { %v618_v8 = vsel %vm1633_vm12, %v615_v59, %v617_v60  ;;  %v619_v9 = vsel %vm1625_vm1, %v617_v60, %v615_v59  ;;  %vm1646_vm12 = vmmov %vm1625_vm1 }
 0x136   : > { %v628_v62 = vadd.f32 %v1452_v56, %v618_v8  ;;  %v629_v63 = vadd.f32 %v1455_v57, %v619_v9  ;;  %v613_v1 = vmax.f32 %v592_v61, %v611_v58  ;;  %vm1647_vm1 = vmmov %vm1634_vm2 }
 0x138   : > { %v632_v2 = vcombine.low %v628_v62, %v629_v63 }
 0x13a   : > { %v634_v3 = vmax.f32 %v613_v1, %v632_v2 }
 0x13c   : > { %640 = vrot.lane.b32.xlu0 %v634_v3, %s1028_s19  ;;  %v638_v0 = vcombine.high %v634_v3, %v634_v3  ;;  %962 = vst [vmem:[%s1337_s8 + $0x8] sm:$0xff] %v634_v3 }
 0x13e   : > { %642 = vrot.lane.b32.xlu1 %v638_v0, %s1028_s19 }
 0x140   : > { %653 = vrot.lane.b32.xlu0 %v634_v3, %s1027_s18 }
 0x142   : > { %655 = vrot.lane.b32.xlu1 %v638_v0, %s1027_s18 }
 0x144   : > { %666 = vrot.lane.b32.xlu0 %v634_v3, %s1029_s22 }
 0x146   : > { %668 = vrot.lane.b32.xlu1 %v638_v0, %s1029_s22 }
 0x148   : > { %679 = vrot.lane.b32.xlu0 %v634_v3, %s1030_s24 }
 0x14a   : > { %681 = vrot.lane.b32.xlu1 %v638_v0, %s1030_s24 }
 0x1ae   : > { %v641_v4 = vpop.permute.xlu0 %640 }
 0x1b0   : > { %v643_v11 = vpop.permute.xlu1 %642 }
 0x1b1   : > { %v644_v13 = vsel %vm1634_vm2, %v641_v4, %v643_v11  ;;  %v645_v14 = vsel %vm1635_vm3, %v643_v11, %v641_v4  ;;  %vm1648_vm2 = vmmov %vm1647_vm1 }
 0x1b2   : > { %v654_v15 = vpop.permute.xlu0 %653  ;;  %v646_v16 = vadd.f32 %v645_v14, %v1267_v25  ;;  %v647_v17 = vadd.f32 %v644_v13, %v1270_v26  ;;  %vm1649_vm3 = vmmov %vm1636_vm0 }
 0x1b4   : > { %v656_v10 = vpop.permute.xlu1 %655  ;;  %v650_v23 = vcombine.low %v646_v16, %v647_v17 }
 0x1b5   : > { %v657_v18 = vsel %vm1636_vm0, %v654_v15, %v656_v10  ;;  %v658_v19 = vsel %vm1637_vm13, %v656_v10, %v654_v15  ;;  %vm1650_vm13 = vmmov %vm1638_vm11 }
 0x1b6   : > { %v659_v20 = vadd.f32 %v657_v18, %v1276_v27  ;;  %v660_v21 = vadd.f32 %v658_v19, %v1279_v28  ;;  %v667_v22 = vpop.permute.xlu0 %666  ;;  %v652_v6 = vmax.f32 %v634_v3, %v650_v23 }
 0x1b8   : > { %v669_v30 = vpop.permute.xlu1 %668  ;;  %v663_v35 = vcombine.low %v659_v20, %v660_v21 }
 0x1b9   : > { %v670_v33 = vsel %vm1638_vm11, %v667_v22, %v669_v30  ;;  %v671_v34 = vsel %vm1639_vm15, %v669_v30, %v667_v22  ;;  %vm1651_vm15 = vmmov %vm1640_vm4 }
 0x1ba   : > { %v672_v36 = vadd.f32 %v671_v34, %v1294_v39  ;;  %v673_v5 = vadd.f32 %v670_v33, %v1297_v40  ;;  %v680_v38 = vpop.permute.xlu0 %679  ;;  %v665_v46 = vmax.f32 %v652_v6, %v663_v35 }
 0x1bc   : > { %v676_v37 = vcombine.low %v672_v36, %v673_v5  ;;  %v682_v41 = vpop.permute.xlu1 %681 }
 0x1bd   : > { %v683_v42 = vsel %vm1640_vm4, %v680_v38, %v682_v41  ;;  %v684_v45 = vsel %vm1641_vm5, %v682_v41, %v680_v38  ;;  %vm1652_vm5 = vmmov %vm1642_vm6 }
 0x1be   : > { %v685_v47 = vadd.f32 %v683_v42, %v1309_v52  ;;  %v686_v48 = vadd.f32 %v684_v45, %v1312_v53  ;;  %v678_v49 = vmax.f32 %v665_v46, %v676_v37 }
 0x1c0   : > { %v689_v50 = vcombine.low %v685_v47, %v686_v48 }
 0x1c2   : > { %v691_v51 = vmax.f32 %v678_v49, %v689_v50 }
 0x1c4   : > { %695 = vrot.lane.b32.xlu0 %v691_v51, %s1031_s28  ;;  %v693_v54 = vcombine.high %v691_v51, %v691_v51 }
 0x1c6   : > { %697 = vrot.lane.b32.xlu1 %v693_v54, %s1031_s28 }
 0x1c8   : > { %708 = vrot.lane.b32.xlu0 %v691_v51, %s1032_s29 }
 0x1ca   : > { %710 = vrot.lane.b32.xlu1 %v693_v54, %s1032_s29 }
 0x1cc   : > { %721 = vrot.lane.b32.xlu0 %v691_v51, %s1033_s30 }
 0x1ce   : > { %723 = vrot.lane.b32.xlu1 %v693_v54, %s1033_s30 }
 0x1d0   : > { %734 = vrot.lane.b32.xlu0 %v691_v51, %s1034_s4 }
 0x1d2   : > { %736 = vrot.lane.b32.xlu1 %v693_v54, %s1034_s4 }
 0x236   : > { %v696_v55 = vpop.permute.xlu0 %695 }
 0x238   : > { %v698_v7 = vpop.permute.xlu1 %697 }
 0x239   : > { %v699_v58 = vsel %vm1642_vm6, %v696_v55, %v698_v7  ;;  %v700_v59 = vsel %vm1643_vm7, %v698_v7, %v696_v55  ;;  %vm1653_vm6 = vmmov %vm1652_vm5 }
 0x23a   : > { %v709_v60 = vpop.permute.xlu0 %708  ;;  %v701_v8 = vadd.f32 %v700_v59, %v1411_v24  ;;  %v702_v9 = vadd.f32 %v699_v58, %v1414_v29  ;;  %vm1654_vm7 = vmmov %vm1631_vm8 }
 0x23c   : > { %v711_v61 = vpop.permute.xlu1 %710  ;;  %v705_v0 = vcombine.low %v701_v8, %v702_v9 }
 0x23d   : > { %v712_v62 = vsel %vm1631_vm8, %v709_v60, %v711_v61  ;;  %v713_v63 = vsel %vm1644_vm9, %v711_v61, %v709_v60  ;;  %vm1655_vm8 = vmmov %vm1654_vm7 }
 0x23e   : > { %v714_v1 = vadd.f32 %v712_v62, %v1420_v31  ;;  %v715_v2 = vadd.f32 %v713_v63, %v1423_v32  ;;  %v722_v3 = vpop.permute.xlu0 %721  ;;  %v707_v17 = vmax.f32 %v691_v51, %v705_v0  ;;  %vm1656_vm9 = vmmov %vm1645_vm10 }
 0x240   : > { %v724_v4 = vpop.permute.xlu1 %723  ;;  %v718_v14 = vcombine.low %v714_v1, %v715_v2 }
 0x241   : > { %v725_v11 = vsel %vm407_vm14, %v722_v3, %v724_v4  ;;  %v726_v13 = vsel %vm407_vm14, %v724_v4, %v722_v3 }
 0x242   : > { %v727_v15 = vadd.f32 %v726_v13, %v1438_v43  ;;  %v728_v16 = vadd.f32 %v725_v11, %v1441_v44  ;;  %v735_v18 = vpop.permute.xlu0 %734  ;;  %v720_v22 = vmax.f32 %v707_v17, %v718_v14 }
 0x244   : > { %v731_v10 = vcombine.low %v727_v15, %v728_v16  ;;  %v737_v19 = vpop.permute.xlu1 %736 }
 0x245   : > { %v738_v20 = vsel %vm1645_vm10, %v735_v18, %v737_v19  ;;  %v739_v21 = vsel %vm1646_vm12, %v737_v19, %v735_v18  ;;  %vm1657_vm10 = vmmov %vm1656_vm9 }
 0x246   : > { %v740_v23 = vadd.f32 %v738_v20, %v1452_v56  ;;  %v741_v30 = vadd.f32 %v739_v21, %v1455_v57  ;;  %v733_v33 = vmax.f32 %v720_v22, %v731_v10 }
 0x248   : > { %v744_v34 = vcombine.low %v740_v23, %v741_v30 }
 0x24a   : > { %v746_v35 = vmax.f32 %v733_v33, %v744_v34 }
 0x24c   : > { %752 = vrot.lane.b32.xlu0 %v746_v35, %s1028_s19  ;;  %v750_v36 = vcombine.high %v746_v35, %v746_v35  ;;  %963 = vst [vmem:[%s1337_s8 + $0x10] sm:$0xff] %v746_v35 }
 0x24e   : > { %754 = vrot.lane.b32.xlu1 %v750_v36, %s1028_s19 }
 0x250   : > { %765 = vrot.lane.b32.xlu0 %v746_v35, %s1027_s18 }
 0x252   : > { %767 = vrot.lane.b32.xlu1 %v750_v36, %s1027_s18 }
 0x254   : > { %778 = vrot.lane.b32.xlu0 %v746_v35, %s1029_s22 }
 0x256   : > { %780 = vrot.lane.b32.xlu1 %v750_v36, %s1029_s22 }
 0x258   : > { %791 = vrot.lane.b32.xlu0 %v746_v35, %s1030_s24 }
 0x25a   : > { %793 = vrot.lane.b32.xlu1 %v750_v36, %s1030_s24 }
 0x2be   : > { %v753_v5 = vpop.permute.xlu0 %752 }
 0x2c0   : > { %v755_v6 = vpop.permute.xlu1 %754 }
 0x2c1   : > { %v756_v37 = vsel %vm1647_vm1, %v753_v5, %v755_v6  ;;  %v757_v38 = vsel %vm1648_vm2, %v755_v6, %v753_v5 }
 0x2c2   : > { %v766_v41 = vpop.permute.xlu0 %765  ;;  %v758_v42 = vadd.f32 %v757_v38, %v1267_v25  ;;  %v759_v45 = vadd.f32 %v756_v37, %v1270_v26 }
 0x2c4   : > { %v768_v46 = vpop.permute.xlu1 %767  ;;  %v762_v54 = vcombine.low %v758_v42, %v759_v45 }
 0x2c5   : > { %v769_v47 = vsel %vm1649_vm3, %v766_v41, %v768_v46  ;;  %v770_v48 = vsel %vm1636_vm0, %v768_v46, %v766_v41 }
 0x2c6   : > { %v771_v49 = vadd.f32 %v769_v47, %v1276_v27  ;;  %v772_v50 = vadd.f32 %v770_v48, %v1279_v28  ;;  %v779_v51 = vpop.permute.xlu0 %778  ;;  %v764_v60 = vmax.f32 %v746_v35, %v762_v54 }
 0x2c8   : > { %v781_v55 = vpop.permute.xlu1 %780  ;;  %v775_v26 = vcombine.low %v771_v49, %v772_v50 }
 0x2c9   : > { %v782_v7 = vsel %vm1650_vm13, %v779_v51, %v781_v55  ;;  %v783_v25 = vsel %vm1638_vm11, %v781_v55, %v779_v51 }
 0x2ca   : > { %v784_v58 = vadd.f32 %v783_v25, %v1294_v39  ;;  %v785_v59 = vadd.f32 %v782_v7, %v1297_v40  ;;  %v792_v9 = vpop.permute.xlu0 %791  ;;  %v777_v62 = vmax.f32 %v764_v60, %v775_v26 }
 0x2cc   : > { %v788_v8 = vcombine.low %v784_v58, %v785_v59  ;;  %v794_v27 = vpop.permute.xlu1 %793 }
 0x2cd   : > { %v795_v28 = vsel %vm1651_vm15, %v792_v9, %v794_v27  ;;  %v796_v61 = vsel %vm1640_vm4, %v794_v27, %v792_v9 }
 0x2ce   : > { %v797_v63 = vadd.f32 %v795_v28, %v1309_v52  ;;  %v798_v1 = vadd.f32 %v796_v61, %v1312_v53  ;;  %v790_v2 = vmax.f32 %v777_v62, %v788_v8 }
 0x2d0   : > { %v801_v3 = vcombine.low %v797_v63, %v798_v1 }
 0x2d2   : > { %v803_v39 = vmax.f32 %v790_v2, %v801_v3 }
 0x2d4   : > { %807 = vrot.lane.b32.xlu0 %v803_v39, %s1031_s28  ;;  %v805_v40 = vcombine.high %v803_v39, %v803_v39 }
 0x2d6   : > { %809 = vrot.lane.b32.xlu1 %v805_v40, %s1031_s28 }
 0x2d8   : > { %820 = vrot.lane.b32.xlu0 %v803_v39, %s1032_s29 }
 0x2da   : > { %822 = vrot.lane.b32.xlu1 %v805_v40, %s1032_s29 }
 0x2dc   : > { %833 = vrot.lane.b32.xlu0 %v803_v39, %s1033_s30 }
 0x2de   : > { %835 = vrot.lane.b32.xlu1 %v805_v40, %s1033_s30 }
 0x2e0   : > { %846 = vrot.lane.b32.xlu0 %v803_v39, %s1034_s4 }
 0x2e2   : > { %848 = vrot.lane.b32.xlu1 %v805_v40, %s1034_s4 }
 0x346   : > { %v808_v52 = vpop.permute.xlu0 %807 }
 0x348   : > { %v810_v53 = vpop.permute.xlu1 %809 }
 0x349   : > { %v811_v0 = vsel %vm1652_vm5, %v808_v52, %v810_v53  ;;  %v812_v4 = vsel %vm1653_vm6, %v810_v53, %v808_v52 }
 0x34a   : > { %v821_v11 = vpop.permute.xlu0 %820  ;;  %v813_v13 = vadd.f32 %v812_v4, %v1411_v24  ;;  %v814_v14 = vadd.f32 %v811_v0, %v1414_v29 }
 0x34c   : > { %v823_v15 = vpop.permute.xlu1 %822  ;;  %v817_v20 = vcombine.low %v813_v13, %v814_v14 }
 0x34d   : > { %v824_v16 = vsel %vm1654_vm7, %v821_v11, %v823_v15  ;;  %v825_v17 = vsel %vm1655_vm8, %v823_v15, %v821_v11 }
 0x34e   : > { %v826_v10 = vadd.f32 %v824_v16, %v1420_v31  ;;  %v827_v18 = vadd.f32 %v825_v17, %v1423_v32  ;;  %v834_v19 = vpop.permute.xlu0 %833  ;;  %v819_v33 = vmax.f32 %v803_v39, %v817_v20 }
 0x350   : > { %v836_v21 = vpop.permute.xlu1 %835  ;;  %v830_v29 = vcombine.low %v826_v10, %v827_v18 }
 0x351   : > { %v837_v22 = vsel %vm407_vm14, %v834_v19, %v836_v21  ;;  %v838_v24 = vsel %vm407_vm14, %v836_v21, %v834_v19 }
 0x352   : > { %v839_v23 = vadd.f32 %v838_v24, %v1438_v43  ;;  %v840_v30 = vadd.f32 %v837_v22, %v1441_v44  ;;  %v847_v31 = vpop.permute.xlu0 %846  ;;  %v832_v5 = vmax.f32 %v819_v33, %v830_v29 }
 0x354   : > { %v843_v34 = vcombine.low %v839_v23, %v840_v30  ;;  %v849_v35 = vpop.permute.xlu1 %848 }
 0x355   : > { %v850_v32 = vsel %vm1656_vm9, %v847_v31, %v849_v35  ;;  %v851_v36 = vsel %vm1657_vm10, %v849_v35, %v847_v31 }
 0x356   : > { %v852_v6 = vadd.f32 %v850_v32, %v1452_v56  ;;  %v853_v37 = vadd.f32 %v851_v36, %v1455_v57  ;;  %v845_v38 = vmax.f32 %v832_v5, %v843_v34 }
 0x358   : > { %v856_v41 = vcombine.low %v852_v6, %v853_v37 }
 0x35a   : > { %v858_v43 = vmax.f32 %v845_v38, %v856_v41 }
 0x35c   : > { %964 = vst [vmem:[%s1337_s8 + $0x18] sm:$0xff] %v858_v43 }
 0x35d PF: > { %s13_s14 = sadd.s32 1, %s1025_s14   ;;  %s1658_s12 = smov %s1021_s13 }
 0x35e   : > { %p10_p5 = scmp.ge.s32.totalorder %s13_s14, 4   ;;  %s1659_s13 = smov %s1661_s15 }
 0x360   :  { %12 = sbr.rel (!%p10_p5) target bundleno = 2 (0x2), region = 65 }

</bundles_post_ra>
